<compile_context>
chip_gen: v7x
topology: tpu7x:2x2x1
jax: 0.10.0
libtpu: 0.0.40
codegen_flags: <defaults>
</compile_context>

<pallas_src>
import math
import functools

import jax
import jax.numpy as jnp
from jax import lax
from jax.experimental import pallas as pl
from jax.experimental.pallas import tpu as pltpu

LN_EPS = 1e-5      # torch.nn.LayerNorm default
LANE = 128         # TPU lane width
SUBLANE = 8        # f32 sublane count


def _round_up(v, m):
    return ((v + m - 1) // m) * m


def _mlp_fused_kernel(x_ref, *refs, real_in_dims):
    """Whole MLP in one kernel: (LN -> Linear -> GELU) x (L-1), then LN -> Linear.

    x_ref: [TB, Dp] activation tile (zero-padded beyond the real feature dim).
    refs:  per layer (gamma[1,Dp], beta[1,Dp], W[Dp,Dp] bf16, bias[1,Dp]), then o_ref[TB,Dp].
    """
    o_ref = refs[-1]
    prefs = refs[:-1]
    num_layers = len(real_in_dims)

    h = x_ref[...].astype(jnp.float32)            # [TB, Dp]
    tb, dp = h.shape
    inv_sqrt2 = 1.0 / math.sqrt(2.0)

    # num_layers is small & static -> unrolled Python loop (single fused trace).
    for li in range(num_layers):
        g = prefs[4 * li][...]                    # [1, Dp]  f32, zero-padded
        be = prefs[4 * li + 1][...]               # [1, Dp]  f32, zero-padded
        w_ref = prefs[4 * li + 2]                 # [Dp, Dp] bf16, zero-padded
        bias = prefs[4 * li + 3][...]             # [1, Dp]  f32, zero-padded
        din = real_in_dims[li]

        # LayerNorm over the real feature lanes only (padded lanes of h are zero).
        if din == dp:
            mean = jnp.mean(h, axis=-1, keepdims=True)
            xc = h - mean
        else:
            lane = lax.broadcasted_iota(jnp.int32, (tb, dp), 1)
            mean = jnp.sum(h, axis=-1, keepdims=True) * (1.0 / din)
            xc = jnp.where(lane < din, h - mean, 0.0)
        var = jnp.sum(xc * xc, axis=-1, keepdims=True) * (1.0 / din)
        xn = xc * lax.rsqrt(var + LN_EPS)
        xn = xn * g + be                          # padded gamma/beta == 0 -> zero lanes

        # MXU matmul: bf16 operands, f32 accumulation. LN/GELU stay f32 on the VPU/EUP.
        y = jnp.dot(xn.astype(w_ref.dtype), w_ref[...],
                    preferred_element_type=jnp.float32) + bias

        if li < num_layers - 1:                   # last layer has no GELU
            # Exact (erf-based) GELU, matching torch.nn.GELU default.
            y = 0.5 * y * (1.0 + lax.erf(y * inv_sqrt2))
        h = y

    o_ref[...] = h.astype(o_ref.dtype)


def mlp_forward(x, params, *, block_b=None, matmul_dtype=jnp.bfloat16):
    """Fused MLP forward.

    x:      [B, input_dim] float32
    params: list of (gamma[n], beta[n], W[n, k] (pre-transposed), bias[k]) per layer.
    """
    B, input_dim = x.shape
    out_dims = [w.shape[1] for (_, _, w, _) in params]
    output_dim = out_dims[-1]

    # Single lane-dense padded width shared by all layers.
    dp = max(_round_up(d, LANE) for d in [input_dim] + out_dims)

    # Batch tiling: multiple of 8 sublanes; >= 2 grid steps when the batch allows it,
    # so both v7x TensorCores get work and x/out tile DMA pipelines under compute.
    if block_b is None:
        block_b = SUBLANE
        for cand in (512, 256, 128, 64, 32, 16, 8):
            if B >= 2 * cand:
                block_b = cand
                break
    bp = _round_up(max(B, block_b), block_b)

    x_pad = jnp.zeros((bp, dp), jnp.float32).at[:B, :input_dim].set(
        x.astype(jnp.float32))

    real_in_dims = [input_dim] + out_dims[:-1]
    flat_params = []
    param_specs = []
    for (gamma, beta, w, bias) in params:
        din, dout = w.shape
        g_pad = jnp.zeros((1, dp), jnp.float32).at[0, :din].set(gamma.astype(jnp.float32))
        b_pad = jnp.zeros((1, dp), jnp.float32).at[0, :din].set(beta.astype(jnp.float32))
        w_pad = jnp.zeros((dp, dp), matmul_dtype).at[:din, :dout].set(
            w.astype(matmul_dtype))
        bias_pad = jnp.zeros((1, dp), jnp.float32).at[0, :dout].set(
            bias.astype(jnp.float32))
        flat_params += [g_pad, b_pad, w_pad, bias_pad]
        # Constant index maps -> parameters are DMA'd once and stay resident in VMEM.
        param_specs += [
            pl.BlockSpec((1, dp), lambda i: (0, 0)),
            pl.BlockSpec((1, dp), lambda i: (0, 0)),
            pl.BlockSpec((dp, dp), lambda i: (0, 0)),
            pl.BlockSpec((1, dp), lambda i: (0, 0)),
        ]

    # TODO(synk): for hidden dims >> 128 (v7x 64 MiB VMEM), tile the K axis with an f32
    # accumulator scratch (extra grid axis marked "arbitrary") and set vmem_limit_bytes
    # with headroom instead of keeping full (Dp, Dp) weights resident.

    kernel = functools.partial(_mlp_fused_kernel, real_in_dims=tuple(real_in_dims))
    out_pad = pl.pallas_call(
        kernel,
        out_shape=jax.ShapeDtypeStruct((bp, dp), x.dtype),
        grid_spec=pltpu.PrefetchScalarGridSpec(
            num_scalar_prefetch=0,
            grid=(bp // block_b,),
            in_specs=[pl.BlockSpec((block_b, dp), lambda i: (i, 0))] + param_specs,
            out_specs=pl.BlockSpec((block_b, dp), lambda i: (i, 0)),
        ),
        compiler_params=pltpu.CompilerParams(
            dimension_semantics=("parallel",)),
    )(x_pad, *flat_params)

    return out_pad[:B, :output_dim]


def init_mlp_params(key, input_dim, hidden_dim, output_dim, num_layers):
    """Deterministic synthetic parameters matching the torch module's shapes."""
    dims_in = [input_dim] + [hidden_dim] * (num_layers - 1)
    dims_out = [hidden_dim] * (num_layers - 1) + [output_dim]
    params = []
    for n, k in zip(dims_in, dims_out):
        key, k1, k2, k3, k4 = jax.random.split(key, 5)
        gamma = 1.0 + 0.1 * jax.random.normal(k1, (n,), jnp.float32)
        beta = 0.1 * jax.random.normal(k2, (n,), jnp.float32)
        bound = 1.0 / math.sqrt(n)
        # torch stores Linear weight as [out, in]; we store pre-transposed [in, out]
        w = jax.random.uniform(k3, (n, k), jnp.float32, -bound, bound)
        b = jax.random.uniform(k4, (k,), jnp.float32, -bound, bound)
        params.append((gamma, beta, w, b))
    return params


def mlp_reference(x, params, *, matmul_dtype=jnp.float32):
    """Pure-JAX reference. matmul_dtype=bfloat16 mirrors the kernel's MXU numerics."""
    num_layers = len(params)
    y = x.astype(jnp.float32)
    for li, (gamma, beta, w, b) in enumerate(params):
        mean = jnp.mean(y, axis=-1, keepdims=True)
        var = jnp.mean((y - mean) ** 2, axis=-1, keepdims=True)
        yn = (y - mean) * lax.rsqrt(var + LN_EPS) * gamma + beta
        y = jnp.dot(yn.astype(matmul_dtype), w.astype(matmul_dtype),
                    preferred_element_type=jnp.float32) + b
        if li < num_layers - 1:
            y = 0.5 * y * (1.0 + lax.erf(y / math.sqrt(2.0)))
    return y


if __name__ == "__main__":
    # Config implied by the module: input_dim, hidden_dim, num_layers; output_dim separate.
    input_dim, hidden_dim, output_dim, num_layers = 32, 32, 16, 3
    batch = 16   # -> 2 batch tiles of 8 rows (2 "parallel" grid steps)

    key = jax.random.PRNGKey(0)
    kx, kp = jax.random.split(key)
    x = jax.random.normal(kx, (batch, input_dim), jnp.float32)
    params = init_mlp_params(kp, input_dim, hidden_dim, output_dim, num_layers)

    out = mlp_forward(x, params)
    out = jax.block_until_ready(out)
    assert out.shape == (batch, output_dim)

    # Tight check vs a reference mirroring kernel numerics (bf16 at the matmul boundary).
    ref_bf16 = mlp_reference(x, params, matmul_dtype=jnp.bfloat16)
    assert jnp.max(jnp.abs(out - ref_bf16)) < 1e-2

    # Looser semantic check vs full-f32 torch-equivalent math (bf16 MXU rounding only).
    ref_f32 = mlp_reference(x, params, matmul_dtype=jnp.float32)
    assert jnp.max(jnp.abs(out - ref_f32)) < 1e-1

    print("KERNEL_OK")
</pallas_src>

<mosaic_0001>
module attributes {stable_mosaic.version = 11 : i64} {
  func.func @_mlp_fused_kernel(%arg0: i32, %arg1: memref<8x128xf32, #tpu.memory_space<vmem>>, %arg2: memref<1x128xf32, #tpu.memory_space<vmem>>, %arg3: memref<1x128xf32, #tpu.memory_space<vmem>>, %arg4: memref<128x128xbf16, #tpu.memory_space<vmem>>, %arg5: memref<1x128xf32, #tpu.memory_space<vmem>>, %arg6: memref<1x128xf32, #tpu.memory_space<vmem>>, %arg7: memref<1x128xf32, #tpu.memory_space<vmem>>, %arg8: memref<128x128xbf16, #tpu.memory_space<vmem>>, %arg9: memref<1x128xf32, #tpu.memory_space<vmem>>, %arg10: memref<1x128xf32, #tpu.memory_space<vmem>>, %arg11: memref<1x128xf32, #tpu.memory_space<vmem>>, %arg12: memref<128x128xbf16, #tpu.memory_space<vmem>>, %arg13: memref<1x128xf32, #tpu.memory_space<vmem>>, %arg14: memref<8x128xf32, #tpu.memory_space<vmem>>) attributes {dimension_semantics = [#tpu.dimension_semantics<parallel>], iteration_bounds = array<i64: 2>, scalar_prefetch = 0 : i64, scratch_operands = 0 : i64, tpu.core_type = #tpu.core_type<tc>, window_params = [{transform_indices = @transform_0, window_bounds = array<i64: 8, 128>}, {pipeline_mode = #tpu.pipeline_mode<synchronous>, transform_indices = @transform_1, window_bounds = array<i64: 1, 128>}, {pipeline_mode = #tpu.pipeline_mode<synchronous>, transform_indices = @transform_2, window_bounds = array<i64: 1, 128>}, {pipeline_mode = #tpu.pipeline_mode<synchronous>, transform_indices = @transform_3, window_bounds = array<i64: 128, 128>}, {pipeline_mode = #tpu.pipeline_mode<synchronous>, transform_indices = @transform_4, window_bounds = array<i64: 1, 128>}, {pipeline_mode = #tpu.pipeline_mode<synchronous>, transform_indices = @transform_5, window_bounds = array<i64: 1, 128>}, {pipeline_mode = #tpu.pipeline_mode<synchronous>, transform_indices = @transform_6, window_bounds = array<i64: 1, 128>}, {pipeline_mode = #tpu.pipeline_mode<synchronous>, transform_indices = @transform_7, window_bounds = array<i64: 128, 128>}, {pipeline_mode = #tpu.pipeline_mode<synchronous>, transform_indices = @transform_8, window_bounds = array<i64: 1, 128>}, {pipeline_mode = #tpu.pipeline_mode<synchronous>, transform_indices = @transform_9, window_bounds = array<i64: 1, 128>}, {pipeline_mode = #tpu.pipeline_mode<synchronous>, transform_indices = @transform_10, window_bounds = array<i64: 1, 128>}, {pipeline_mode = #tpu.pipeline_mode<synchronous>, transform_indices = @transform_11, window_bounds = array<i64: 128, 128>}, {pipeline_mode = #tpu.pipeline_mode<synchronous>, transform_indices = @transform_12, window_bounds = array<i64: 1, 128>}, {transform_indices = @transform_13, window_bounds = array<i64: 8, 128>}]} {
    %c0 = arith.constant 0 : index
    %c0_0 = arith.constant 0 : index
    %0 = vector.load %arg1[%c0, %c0_0] : memref<8x128xf32, #tpu.memory_space<vmem>>, vector<8x128xf32>
    %c0_1 = arith.constant 0 : index
    %c0_2 = arith.constant 0 : index
    %1 = vector.load %arg2[%c0_1, %c0_2] : memref<1x128xf32, #tpu.memory_space<vmem>>, vector<1x128xf32>
    %c0_3 = arith.constant 0 : index
    %c0_4 = arith.constant 0 : index
    %2 = vector.load %arg3[%c0_3, %c0_4] : memref<1x128xf32, #tpu.memory_space<vmem>>, vector<1x128xf32>
    %c0_5 = arith.constant 0 : index
    %c0_6 = arith.constant 0 : index
    %3 = vector.load %arg5[%c0_5, %c0_6] : memref<1x128xf32, #tpu.memory_space<vmem>>, vector<1x128xf32>
    %4 = tpu.iota {dimensions = array<i32: 1>} : vector<8x128xi32>
    %cst = arith.constant dense<0.000000e+00> : vector<8xf32>
    %5 = vector.multi_reduction <add>, %0, %cst [1] : vector<8x128xf32> to vector<8xf32>
    %6 = vector.shape_cast %5 : vector<8xf32> to vector<8x1xf32>
    %cst_7 = arith.constant 3.125000e-02 : f32
    %7 = vector.broadcast %cst_7 : f32 to vector<8x1xf32>
    %8 = arith.mulf %6, %7 : vector<8x1xf32>
    %c32_i32 = arith.constant 32 : i32
    %9 = vector.broadcast %c32_i32 : i32 to vector<8x128xi32>
    %10 = arith.cmpi slt, %4, %9 : vector<8x128xi32>
    %11 = vector.broadcast %8 : vector<8x1xf32> to vector<8x128xf32>
    %12 = arith.subf %0, %11 : vector<8x128xf32>
    %cst_8 = arith.constant 0.000000e+00 : f32
    %13 = vector.broadcast %cst_8 : f32 to vector<8x128xf32>
    %14 = arith.select %10, %12, %13 : vector<8x128xi1>, vector<8x128xf32>
    %15 = arith.mulf %14, %14 : vector<8x128xf32>
    %cst_9 = arith.constant dense<0.000000e+00> : vector<8xf32>
    %16 = vector.multi_reduction <add>, %15, %cst_9 [1] : vector<8x128xf32> to vector<8xf32>
    %17 = vector.shape_cast %16 : vector<8xf32> to vector<8x1xf32>
    %cst_10 = arith.constant 3.125000e-02 : f32
    %18 = vector.broadcast %cst_10 : f32 to vector<8x1xf32>
    %19 = arith.mulf %17, %18 : vector<8x1xf32>
    %cst_11 = arith.constant 9.99999974E-6 : f32
    %20 = vector.broadcast %cst_11 : f32 to vector<8x1xf32>
    %21 = arith.addf %19, %20 : vector<8x1xf32>
    %22 = math.rsqrt %21 : vector<8x1xf32>
    %23 = vector.broadcast %22 : vector<8x1xf32> to vector<8x128xf32>
    %24 = arith.mulf %14, %23 : vector<8x128xf32>
    %25 = vector.broadcast %1 : vector<1x128xf32> to vector<8x128xf32>
    %26 = arith.mulf %24, %25 : vector<8x128xf32>
    %27 = vector.broadcast %2 : vector<1x128xf32> to vector<8x128xf32>
    %28 = arith.addf %26, %27 : vector<8x128xf32>
    %29 = arith.truncf %28 : vector<8x128xf32> to vector<8x128xbf16>
    %c0_12 = arith.constant 0 : index
    %c0_13 = arith.constant 0 : index
    %30 = vector.load %arg4[%c0_12, %c0_13] : memref<128x128xbf16, #tpu.memory_space<vmem>>, vector<128x128xbf16>
    %cst_14 = arith.constant dense<0.000000e+00> : vector<8x128xf32>
    %31 = tpu.matmul %29, %30, %cst_14 {dimension_numbers = #tpu.dot_dimension_numbers<[1], [0], [0], [1], [0, 0, 1, 1], [], []>} : vector<8x128xbf16>, vector<128x128xbf16>, vector<8x128xf32> -> vector<8x128xf32>
    %32 = vector.broadcast %3 : vector<1x128xf32> to vector<8x128xf32>
    %33 = arith.addf %31, %32 : vector<8x128xf32>
    %cst_15 = arith.constant 5.000000e-01 : f32
    %34 = vector.broadcast %cst_15 : f32 to vector<8x128xf32>
    %35 = arith.mulf %34, %33 : vector<8x128xf32>
    %cst_16 = arith.constant 0.707106769 : f32
    %36 = vector.broadcast %cst_16 : f32 to vector<8x128xf32>
    %37 = arith.mulf %33, %36 : vector<8x128xf32>
    %38 = math.erf %37 : vector<8x128xf32>
    %cst_17 = arith.constant 1.000000e+00 : f32
    %39 = vector.broadcast %cst_17 : f32 to vector<8x128xf32>
    %40 = arith.addf %39, %38 : vector<8x128xf32>
    %41 = arith.mulf %35, %40 : vector<8x128xf32>
    %c0_18 = arith.constant 0 : index
    %c0_19 = arith.constant 0 : index
    %42 = vector.load %arg6[%c0_18, %c0_19] : memref<1x128xf32, #tpu.memory_space<vmem>>, vector<1x128xf32>
    %c0_20 = arith.constant 0 : index
    %c0_21 = arith.constant 0 : index
    %43 = vector.load %arg7[%c0_20, %c0_21] : memref<1x128xf32, #tpu.memory_space<vmem>>, vector<1x128xf32>
    %c0_22 = arith.constant 0 : index
    %c0_23 = arith.constant 0 : index
    %44 = vector.load %arg9[%c0_22, %c0_23] : memref<1x128xf32, #tpu.memory_space<vmem>>, vector<1x128xf32>
    %45 = tpu.iota {dimensions = array<i32: 1>} : vector<8x128xi32>
    %cst_24 = arith.constant dense<0.000000e+00> : vector<8xf32>
    %46 = vector.multi_reduction <add>, %41, %cst_24 [1] : vector<8x128xf32> to vector<8xf32>
    %47 = vector.shape_cast %46 : vector<8xf32> to vector<8x1xf32>
    %cst_25 = arith.constant 3.125000e-02 : f32
    %48 = vector.broadcast %cst_25 : f32 to vector<8x1xf32>
    %49 = arith.mulf %47, %48 : vector<8x1xf32>
    %c32_i32_26 = arith.constant 32 : i32
    %50 = vector.broadcast %c32_i32_26 : i32 to vector<8x128xi32>
    %51 = arith.cmpi slt, %45, %50 : vector<8x128xi32>
    %52 = vector.broadcast %49 : vector<8x1xf32> to vector<8x128xf32>
    %53 = arith.subf %41, %52 : vector<8x128xf32>
    %cst_27 = arith.constant 0.000000e+00 : f32
    %54 = vector.broadcast %cst_27 : f32 to vector<8x128xf32>
    %55 = arith.select %51, %53, %54 : vector<8x128xi1>, vector<8x128xf32>
    %56 = arith.mulf %55, %55 : vector<8x128xf32>
    %cst_28 = arith.constant dense<0.000000e+00> : vector<8xf32>
    %57 = vector.multi_reduction <add>, %56, %cst_28 [1] : vector<8x128xf32> to vector<8xf32>
    %58 = vector.shape_cast %57 : vector<8xf32> to vector<8x1xf32>
    %cst_29 = arith.constant 3.125000e-02 : f32
    %59 = vector.broadcast %cst_29 : f32 to vector<8x1xf32>
    %60 = arith.mulf %58, %59 : vector<8x1xf32>
    %cst_30 = arith.constant 9.99999974E-6 : f32
    %61 = vector.broadcast %cst_30 : f32 to vector<8x1xf32>
    %62 = arith.addf %60, %61 : vector<8x1xf32>
    %63 = math.rsqrt %62 : vector<8x1xf32>
    %64 = vector.broadcast %63 : vector<8x1xf32> to vector<8x128xf32>
    %65 = arith.mulf %55, %64 : vector<8x128xf32>
    %66 = vector.broadcast %42 : vector<1x128xf32> to vector<8x128xf32>
    %67 = arith.mulf %65, %66 : vector<8x128xf32>
    %68 = vector.broadcast %43 : vector<1x128xf32> to vector<8x128xf32>
    %69 = arith.addf %67, %68 : vector<8x128xf32>
    %70 = arith.truncf %69 : vector<8x128xf32> to vector<8x128xbf16>
    %c0_31 = arith.constant 0 : index
    %c0_32 = arith.constant 0 : index
    %71 = vector.load %arg8[%c0_31, %c0_32] : memref<128x128xbf16, #tpu.memory_space<vmem>>, vector<128x128xbf16>
    %cst_33 = arith.constant dense<0.000000e+00> : vector<8x128xf32>
    %72 = tpu.matmul %70, %71, %cst_33 {dimension_numbers = #tpu.dot_dimension_numbers<[1], [0], [0], [1], [0, 0, 1, 1], [], []>} : vector<8x128xbf16>, vector<128x128xbf16>, vector<8x128xf32> -> vector<8x128xf32>
    %73 = vector.broadcast %44 : vector<1x128xf32> to vector<8x128xf32>
    %74 = arith.addf %72, %73 : vector<8x128xf32>
    %cst_34 = arith.constant 5.000000e-01 : f32
    %75 = vector.broadcast %cst_34 : f32 to vector<8x128xf32>
    %76 = arith.mulf %75, %74 : vector<8x128xf32>
    %cst_35 = arith.constant 0.707106769 : f32
    %77 = vector.broadcast %cst_35 : f32 to vector<8x128xf32>
    %78 = arith.mulf %74, %77 : vector<8x128xf32>
    %79 = math.erf %78 : vector<8x128xf32>
    %cst_36 = arith.constant 1.000000e+00 : f32
    %80 = vector.broadcast %cst_36 : f32 to vector<8x128xf32>
    %81 = arith.addf %80, %79 : vector<8x128xf32>
    %82 = arith.mulf %76, %81 : vector<8x128xf32>
    %c0_37 = arith.constant 0 : index
    %c0_38 = arith.constant 0 : index
    %83 = vector.load %arg10[%c0_37, %c0_38] : memref<1x128xf32, #tpu.memory_space<vmem>>, vector<1x128xf32>
    %c0_39 = arith.constant 0 : index
    %c0_40 = arith.constant 0 : index
    %84 = vector.load %arg11[%c0_39, %c0_40] : memref<1x128xf32, #tpu.memory_space<vmem>>, vector<1x128xf32>
    %c0_41 = arith.constant 0 : index
    %c0_42 = arith.constant 0 : index
    %85 = vector.load %arg13[%c0_41, %c0_42] : memref<1x128xf32, #tpu.memory_space<vmem>>, vector<1x128xf32>
    %86 = tpu.iota {dimensions = array<i32: 1>} : vector<8x128xi32>
    %cst_43 = arith.constant dense<0.000000e+00> : vector<8xf32>
    %87 = vector.multi_reduction <add>, %82, %cst_43 [1] : vector<8x128xf32> to vector<8xf32>
    %88 = vector.shape_cast %87 : vector<8xf32> to vector<8x1xf32>
    %cst_44 = arith.constant 3.125000e-02 : f32
    %89 = vector.broadcast %cst_44 : f32 to vector<8x1xf32>
    %90 = arith.mulf %88, %89 : vector<8x1xf32>
    %c32_i32_45 = arith.constant 32 : i32
    %91 = vector.broadcast %c32_i32_45 : i32 to vector<8x128xi32>
    %92 = arith.cmpi slt, %86, %91 : vector<8x128xi32>
    %93 = vector.broadcast %90 : vector<8x1xf32> to vector<8x128xf32>
    %94 = arith.subf %82, %93 : vector<8x128xf32>
    %cst_46 = arith.constant 0.000000e+00 : f32
    %95 = vector.broadcast %cst_46 : f32 to vector<8x128xf32>
    %96 = arith.select %92, %94, %95 : vector<8x128xi1>, vector<8x128xf32>
    %97 = arith.mulf %96, %96 : vector<8x128xf32>
    %cst_47 = arith.constant dense<0.000000e+00> : vector<8xf32>
    %98 = vector.multi_reduction <add>, %97, %cst_47 [1] : vector<8x128xf32> to vector<8xf32>
    %99 = vector.shape_cast %98 : vector<8xf32> to vector<8x1xf32>
    %cst_48 = arith.constant 3.125000e-02 : f32
    %100 = vector.broadcast %cst_48 : f32 to vector<8x1xf32>
    %101 = arith.mulf %99, %100 : vector<8x1xf32>
    %cst_49 = arith.constant 9.99999974E-6 : f32
    %102 = vector.broadcast %cst_49 : f32 to vector<8x1xf32>
    %103 = arith.addf %101, %102 : vector<8x1xf32>
    %104 = math.rsqrt %103 : vector<8x1xf32>
    %105 = vector.broadcast %104 : vector<8x1xf32> to vector<8x128xf32>
    %106 = arith.mulf %96, %105 : vector<8x128xf32>
    %107 = vector.broadcast %83 : vector<1x128xf32> to vector<8x128xf32>
    %108 = arith.mulf %106, %107 : vector<8x128xf32>
    %109 = vector.broadcast %84 : vector<1x128xf32> to vector<8x128xf32>
    %110 = arith.addf %108, %109 : vector<8x128xf32>
    %111 = arith.truncf %110 : vector<8x128xf32> to vector<8x128xbf16>
    %c0_50 = arith.constant 0 : index
    %c0_51 = arith.constant 0 : index
    %112 = vector.load %arg12[%c0_50, %c0_51] : memref<128x128xbf16, #tpu.memory_space<vmem>>, vector<128x128xbf16>
    %cst_52 = arith.constant dense<0.000000e+00> : vector<8x128xf32>
    %113 = tpu.matmul %111, %112, %cst_52 {dimension_numbers = #tpu.dot_dimension_numbers<[1], [0], [0], [1], [0, 0, 1, 1], [], []>} : vector<8x128xbf16>, vector<128x128xbf16>, vector<8x128xf32> -> vector<8x128xf32>
    %114 = vector.broadcast %85 : vector<1x128xf32> to vector<8x128xf32>
    %115 = arith.addf %113, %114 : vector<8x128xf32>
    %c0_53 = arith.constant 0 : index
    %c0_54 = arith.constant 0 : index
    %116 = vector.load %arg14[%c0_53, %c0_54] : memref<8x128xf32, #tpu.memory_space<vmem>>, vector<8x128xf32>
    tpu.vector_store %arg14[%c0_53, %c0_54], %115 {strides = array<i32>} : memref<8x128xf32, #tpu.memory_space<vmem>>, vector<8x128xf32>,
    return
  }
  func.func @transform_0(%arg0: i32) -> (i32, i32) {
    %c0_i32 = arith.constant 0 : i32
    %c0_i32_0 = arith.constant 0 : i32
    return %arg0, %c0_i32 : i32, i32
  }
  func.func @transform_1(%arg0: i32) -> (i32, i32) {
    %c0_i32 = arith.constant 0 : i32
    %c0_i32_0 = arith.constant 0 : i32
    %c0_i32_1 = arith.constant 0 : i32
    return %c0_i32, %c0_i32_0 : i32, i32
  }
  func.func @transform_2(%arg0: i32) -> (i32, i32) {
    %c0_i32 = arith.constant 0 : i32
    %c0_i32_0 = arith.constant 0 : i32
    %c0_i32_1 = arith.constant 0 : i32
    return %c0_i32, %c0_i32_0 : i32, i32
  }
  func.func @transform_3(%arg0: i32) -> (i32, i32) {
    %c0_i32 = arith.constant 0 : i32
    %c0_i32_0 = arith.constant 0 : i32
    %c0_i32_1 = arith.constant 0 : i32
    return %c0_i32, %c0_i32_0 : i32, i32
  }
  func.func @transform_4(%arg0: i32) -> (i32, i32) {
    %c0_i32 = arith.constant 0 : i32
    %c0_i32_0 = arith.constant 0 : i32
    %c0_i32_1 = arith.constant 0 : i32
    return %c0_i32, %c0_i32_0 : i32, i32
  }
  func.func @transform_5(%arg0: i32) -> (i32, i32) {
    %c0_i32 = arith.constant 0 : i32
    %c0_i32_0 = arith.constant 0 : i32
    %c0_i32_1 = arith.constant 0 : i32
    return %c0_i32, %c0_i32_0 : i32, i32
  }
  func.func @transform_6(%arg0: i32) -> (i32, i32) {
    %c0_i32 = arith.constant 0 : i32
    %c0_i32_0 = arith.constant 0 : i32
    %c0_i32_1 = arith.constant 0 : i32
    return %c0_i32, %c0_i32_0 : i32, i32
  }
  func.func @transform_7(%arg0: i32) -> (i32, i32) {
    %c0_i32 = arith.constant 0 : i32
    %c0_i32_0 = arith.constant 0 : i32
    %c0_i32_1 = arith.constant 0 : i32
    return %c0_i32, %c0_i32_0 : i32, i32
  }
  func.func @transform_8(%arg0: i32) -> (i32, i32) {
    %c0_i32 = arith.constant 0 : i32
    %c0_i32_0 = arith.constant 0 : i32
    %c0_i32_1 = arith.constant 0 : i32
    return %c0_i32, %c0_i32_0 : i32, i32
  }
  func.func @transform_9(%arg0: i32) -> (i32, i32) {
    %c0_i32 = arith.constant 0 : i32
    %c0_i32_0 = arith.constant 0 : i32
    %c0_i32_1 = arith.constant 0 : i32
    return %c0_i32, %c0_i32_0 : i32, i32
  }
  func.func @transform_10(%arg0: i32) -> (i32, i32) {
    %c0_i32 = arith.constant 0 : i32
    %c0_i32_0 = arith.constant 0 : i32
    %c0_i32_1 = arith.constant 0 : i32
    return %c0_i32, %c0_i32_0 : i32, i32
  }
  func.func @transform_11(%arg0: i32) -> (i32, i32) {
    %c0_i32 = arith.constant 0 : i32
    %c0_i32_0 = arith.constant 0 : i32
    %c0_i32_1 = arith.constant 0 : i32
    return %c0_i32, %c0_i32_0 : i32, i32
  }
  func.func @transform_12(%arg0: i32) -> (i32, i32) {
    %c0_i32 = arith.constant 0 : i32
    %c0_i32_0 = arith.constant 0 : i32
    %c0_i32_1 = arith.constant 0 : i32
    return %c0_i32, %c0_i32_0 : i32, i32
  }
  func.func @transform_13(%arg0: i32) -> (i32, i32) {
    %c0_i32 = arith.constant 0 : i32
    %c0_i32_0 = arith.constant 0 : i32
    return %arg0, %c0_i32 : i32, i32
  }
}

</mosaic_0001>

<bundles_post_ra>
// kernel: tpu_custom_call.1
= control target key start
LH: loop header
LB: loop body
LE: loop exit
PB: predicated region body
PF: predicated region fallthrough
CT: control target
= control target key end

     0   :  { %s1904_s0 = inlined_call_operand.hbm [shape: f32[16,128], index: 0, kind: input, shape index: {}]   ;;  %s1905_s1 = inlined_call_operand.vmem [shape: f32[1,128], index: 1, kind: input, shape index: {}]   ;;  %s1906_s2 = inlined_call_operand.vmem [shape: f32[1,128], index: 2, kind: input, shape index: {}]   ;;  %s1907_s3 = inlined_call_operand.hbm [shape: bf16[128,128], index: 3, kind: input, shape index: {}]   ;;  %s1908_s4 = inlined_call_operand.vmem [shape: f32[1,128], index: 4, kind: input, shape index: {}]   ;;  %s1909_s5 = inlined_call_operand.vmem [shape: f32[1,128], index: 5, kind: input, shape index: {}]   ;;  %s1910_s6 = inlined_call_operand.vmem [shape: f32[1,128], index: 6, kind: input, shape index: {}]   ;;  %s1911_s7 = inlined_call_operand.hbm [shape: bf16[128,128], index: 7, kind: input, shape index: {}]   ;;  %s1912_s8 = inlined_call_operand.vmem [shape: f32[1,128], index: 8, kind: input, shape index: {}]   ;;  %s1913_s9 = inlined_call_operand.vmem [shape: f32[1,128], index: 9, kind: input, shape index: {}]   ;;  %s1914_s10 = inlined_call_operand.vmem [shape: f32[1,128], index: 10, kind: input, shape index: {}]   ;;  %s1915_s11 = inlined_call_operand.hbm [shape: bf16[128,128], index: 11, kind: input, shape index: {}]   ;;  %s1916_s12 = inlined_call_operand.vmem [shape: f32[1,128], index: 12, kind: input, shape index: {}]   ;;  %s1917_s13 = inlined_call_operand.hbm [shape: f32[16,128], index: 13, kind: output, shape index: {}]  }
   0x1   :  { %1924 = sst [smem:[#allocation17_spill]] %s1912_s8 }
   0x2   :  { %1925 = sst [smem:[#allocation18_spill]] %s1913_s9 }
   0x3   :  { %1926 = sst [smem:[#allocation19_spill]] %s1914_s10 }
   0x4   :  { %1927 = sst [smem:[#allocation20_spill]] %s1916_s12 }
   0x5   :  { %1928 = sst [smem:[#allocation21_spill]] %s1917_s13 }
   0x6   :  { %18 = vsyncpa [#allocation3], 0 }
   0x7   :  { %20 = vsyncpa [#allocation3 + $0x1], 0 }
   0x8   :  { %21 = vsyncpa [#allocation6], 0 }
   0x9   :  { %22 = vsyncpa [#allocation9], 0 }
   0xa   :  { %23 = vsyncpa [#allocation4], 0 }
   0xb   :  { %25 = vsyncpa [#allocation4 + $0x1], 0  ;;  %s1571_s25 = smov 0   ;;  %s1573_s26 = smov 0  }
   0xc   :  { %s1575_s27 = smov 0   ;;  %s1577_s28 = smov 0  }
   0xd LB: > { %1929 = sst [smem:[#allocation15_spill]] %s1478_s25  ;;  %s1592_s29 = sadd.s32 4294967295, %s1490_s28   ;;  %s1490_s28 = sphi %s1577_s28, %s1957_s28   ;;  %s1486_s27 = sphi %s1575_s27, %s1956_s27   ;;  %s1482_s26 = sphi %s1573_s26, %s1955_s26   ;;  %s1478_s25 = sphi %s1571_s25, %s1954_s25  }
   0xe   : > { %s1049_s30 = sadd.s32 4294967294, %s1490_s28   ;;  %p51_p0 = scmp.ne.s32.totalorder %s1482_s26, %s1478_s25 }
   0xf   : > { %p1921_p1 = scmp.eq.s32.totalorder %s1592_s29, 0  ;;  %p333_p3 = scmp.eq.s32.totalorder %s1049_s30, 1 }
  0x10   : > { %p1050_p5 = scmp.ge.s32.totalorder %s1490_s28, 1  ;;  %p340_p7 = scmp.lt.s32.totalorder %s1490_s28, 3 }
  0x11   : > { %p1601_p4 = por %p1921_p1, %p51_p0  ;;  %p1606_p6 = por %p333_p3, %p51_p0 }
  0x12   : > { %p1611_p8 = pnand %p1050_p5, %p340_p7  ;;  %s1492_s17 = smov [#allocation5]  }
  0x13   : > { %s1930_s14 = scalar_select %p1601_p4, 1, 0 }
  0x14   : > { %s1931_s15 = scalar_select %p1606_p6, 1, 0 }
  0x15   : > { %s1933_s16 = scalar_select %p1611_p8, 1, 0 }
  0x16   : > { %1932 = sst [smem:[#allocation16_spill]] %s1931_s15  ;;  %s358_s18 = sshll.u32 %s1492_s17, 4  ;;  %s1615_s18 = int_to_ptr.vmem [resolvable:$true] %s358_s18 }
  0x17   : > { %p1203_p9 = pneg %p1611_p8  ;;  %s1493_s20 = smov [#allocation7]  }
  0x18   : > { %s380_s21 = sshll.u32 %s1493_s20, 4  ;;  %s1494_s22 = smov [#allocation8]   ;;  %s1626_s21 = int_to_ptr.vmem [resolvable:$true] %s380_s21 }
  0x19   : > { %p1622_p11 = pnand %p1203_p9, %p1921_p1  ;;  %s1628_s23 = sshll.u32 %s1494_s22, 4  ;;  %s403_s23 = int_to_ptr.vmem [resolvable:$true] %s1628_s23 }
  0x1a   : > { %s1302_s17 = scalar_lea.hbm %s1907_s3, 1024 }
  0x1b   : > { %p1303_p12 = scmp.ne.s32.totalorder %s1907_s3, %s1302_s17  ;;  %p1638_p13 = pneg %p1622_p11 }
  0x1c   : > { %p1309_p5 = scmp.lt.u32.totalorder %s1302_s17, %s1907_s3 }
  0x1d   : > { %p1305_p0 = pnand %p1638_p13, %p1303_p12 }
  0x1f   : > { %p1306_p3 = pneg %p1305_p0 }
  0x21   : > { %p1311_p7 = pnand %p1309_p5, %p1306_p3 }
  0x23   : > { %1314 = shalt.err (!%p1311_p7)
}
  0x24   : > { %s1315_s25 = scalar_lea.vmem %s1615_s18, 1024  ;;  %p1323_p2 = scmp.lt.s32.totalorder %s1615_s18, %s1615_s18 }
  0x25   : > { %p1316_p9 = scmp.ne.s32.totalorder %s1615_s18, %s1315_s25  ;;  %p1324_p6 = scmp.lt.s32.totalorder %s1315_s25, %s1315_s25 }
  0x27   : > { %p1318_p10 = pnand %p1316_p9, %p1638_p13  ;;  %p1325_p12 = por %p1324_p6, %p1323_p2 }
  0x29   : > { %p1319_p1 = pneg %p1318_p10 }
  0x2b   : > { %p1326_p0 = pnand %p1325_p12, %p1319_p1 }
  0x2d   : > { %1329 = shalt.err (!%p1326_p0)
}
  0x2e   : > { %s1495_s15 = smov 64   ;;  %s1496_s24 = smov 4  }
  0x2f   : > { %1206 = dma.hbm_to_vmem [thread:$0]  (!%p1622_p11), %s1907_s3, 1024, %s1615_s18, [#allocation6], %s1495_s15, %s1495_s15, %s1496_s24  }
  0x30   : > { %s1330_s25 = scalar_lea.hbm %s1911_s7, 1024 }
  0x31   : > { %p1331_p1 = scmp.ne.s32.totalorder %s1911_s7, %s1330_s25  ;;  %p1337_p10 = scmp.lt.u32.totalorder %s1330_s25, %s1911_s7 }
  0x33   : > { %p1333_p2 = pnand %p1331_p1, %p1638_p13 }
  0x35   : > { %p1334_p6 = pneg %p1333_p2 }
  0x37   : > { %p1339_p3 = pnand %p1337_p10, %p1334_p6 }
  0x39   : > { %1342 = shalt.err (!%p1339_p3)
}
  0x3a   : > { %s1343_s18 = scalar_lea.vmem %s1626_s21, 1024  ;;  %p1351_p12 = scmp.lt.s32.totalorder %s1626_s21, %s1626_s21 }
  0x3b   : > { %p1344_p5 = scmp.ne.s32.totalorder %s1626_s21, %s1343_s18  ;;  %p1352_p0 = scmp.lt.s32.totalorder %s1343_s18, %s1343_s18 }
  0x3d   : > { %p1346_p7 = pnand %p1344_p5, %p1638_p13  ;;  %p1353_p1 = por %p1352_p0, %p1351_p12 }
  0x3f   : > { %p1347_p9 = pneg %p1346_p7 }
  0x41   : > { %p1354_p2 = pnand %p1353_p1, %p1347_p9 }
  0x43   : > { %1357 = shalt.err (!%p1354_p2)
}
  0x44   : > { %1209 = dma.hbm_to_vmem [thread:$0]  (!%p1622_p11), %s1911_s7, 1024, %s1626_s21, [#allocation6], %s1495_s15, %s1495_s15, %s1496_s24  }
  0x45   : > { %s1358_s30 = scalar_lea.hbm %s1915_s11, 1024 }
  0x46   : > { %p1359_p6 = scmp.ne.s32.totalorder %s1915_s11, %s1358_s30  ;;  %p1365_p5 = scmp.lt.u32.totalorder %s1358_s30, %s1915_s11 }
  0x48   : > { %p1361_p10 = pnand %p1359_p6, %p1638_p13 }
  0x4a   : > { %p1362_p3 = pneg %p1361_p10 }
  0x4c   : > { %p1367_p7 = pnand %p1365_p5, %p1362_p3 }
  0x4e   : > { %1370 = shalt.err (!%p1367_p7)
}
  0x4f   : > { %s1371_s18 = scalar_lea.vmem %s403_s23, 1024  ;;  %p1379_p1 = scmp.lt.s32.totalorder %s403_s23, %s403_s23 }
  0x50   : > { %p1372_p9 = scmp.ne.s32.totalorder %s403_s23, %s1371_s18  ;;  %p1380_p2 = scmp.lt.s32.totalorder %s1371_s18, %s1371_s18 }
  0x52   : > { %p1374_p12 = pnand %p1372_p9, %p1638_p13  ;;  %p1381_p4 = por %p1380_p2, %p1379_p1 }
  0x54   : > { %p1375_p0 = pneg %p1374_p12 }
  0x56   : > { %p1382_p8 = pnand %p1381_p4, %p1375_p0 }
  0x58   : > { %1385 = shalt.err (!%p1382_p8)
}
  0x59   : > { %1212 = dma.hbm_to_vmem [thread:$0]  (!%p1622_p11), %s1915_s11, 1024, %s403_s23, [#allocation9], %s1495_s15, %s1495_s15, %s1496_s24  }
  0x5a   : > { %s1711_s13 = sadd.s32 1, %s1490_s28   ;;  %s38_s9 = sadd.s32 1, %s1486_s27 }
  0x5b   : > { %s35_s19 = ssub.s32 %s1490_s28, %s1711_s13  ;;  %p45_p8 = scmp.ne.s32.totalorder %s1486_s27, %s1482_s26 }
  0x5c   : > { %p36_p4 = scmp.eq.s32.totalorder %s35_s19, 0  ;;  %p46_p13 = scmp.eq.s32.totalorder %s1490_s28, 0 }
  0x5d   : > { %p1224_p6 = scmp.lt.s32.totalorder %s1490_s28, 2  ;;  %p1936_p3 = scmp.eq.s32.totalorder %s1592_s29, 1 }
  0x5e   : > { %s1721_s10 = scalar_select %p36_p4, %s1486_s27, %s38_s9  }
  0x5f   : > { %p47_p10 = por %p46_p13, %p45_p8  ;;  %p1725_p5 = por %p1936_p3, %p45_p8 }
  0x60   : > { %s419_s30 = sand.u32 1, %s1486_s27   ;;  %s1056_s17 = sshll.u32 %s1490_s28, 7 }
  0x61   : > { %s1055_s23 = sshll.u32 %s419_s30, 3  ;;  %s1734_s20 = scalar_lea.hbm %s1904_s0, %s1056_s17 }
  0x62   : > { %s423_s22 = scalar_lea.vmem [#allocation2], %s1055_s23  ;;  %p1736_p11 = pnand %p1224_p6, %p47_p10 }
  0x63   : > { %s430_s25 = sshll.u32 %s423_s22, 4  ;;  %s420_s21 = scalar_lea.sflag [#allocation3], %s419_s30  ;;  %s1740_s25 = int_to_ptr.vmem [resolvable:$true] %s430_s25 }
  0x64   : > { %s1386_s8 = scalar_lea.hbm %s1734_s20, 128  ;;  %p1388_p9 = pneg %p1736_p11 }
  0x65   : > { %p1387_p7 = scmp.ne.s32.totalorder %s1734_s20, %s1386_s8  ;;  %s1391_s17 = scalar_lea.hbm %s1904_s0, 256 }
  0x66   : > { %p1392_p1 = scmp.lt.u32.totalorder %s1734_s20, %s1904_s0  ;;  %p1393_p2 = scmp.lt.u32.totalorder %s1391_s17, %s1386_s8 }
  0x67   : > { %p1389_p12 = pnand %p1388_p9, %p1387_p7  ;;  %p1395_p8 = scmp.lt.u32.totalorder %s1386_s8, %s1734_s20 }
  0x68   : > { %p1394_p4 = por %p1393_p2, %p1392_p1 }
  0x69   : > { %p1390_p0 = pneg %p1389_p12 }
  0x6a   : > { %p1396_p13 = por %p1395_p8, %p1394_p4 }
  0x6c   : > { %p1397_p6 = pnand %p1396_p13, %p1390_p0 }
  0x6e   : > { %1400 = shalt.err (!%p1397_p6)
}
  0x6f   : > { %s1401_s30 = scalar_lea.vmem %s1740_s25, 128  ;;  %s1497_s24 = smov [#allocation2]  }
  0x70   : > { %p1402_p10 = scmp.ne.s32.totalorder %s1740_s25, %s1401_s30  ;;  %s1406_s22 = sshll.u32 %s1497_s24, 4  ;;  %s1407_s22 = int_to_ptr.vmem [resolvable:$false] %s1406_s22 }
  0x71   : > { %s1408_s19 = scalar_lea.vmem %s1407_s22, 256  ;;  %p1409_p12 = scmp.lt.s32.totalorder %s1740_s25, %s1407_s22 }
  0x72   : > { %p1404_p3 = pnand %p1402_p10, %p1388_p9  ;;  %p1410_p1 = scmp.lt.s32.totalorder %s1408_s19, %s1401_s30 }
  0x74   : > { %p1405_p7 = pneg %p1404_p3  ;;  %p1411_p2 = por %p1410_p1, %p1409_p12 }
  0x76   : > { %p1412_p4 = pnand %p1411_p2, %p1405_p7 }
  0x78   : > { %1415 = shalt.err (!%p1412_p4)
}
  0x79   : > { %1216 = dma.hbm_to_vmem [thread:$0]  (!%p1736_p11), %s1734_s20, 128, %s1740_s25, %s420_s21  }
  0x7a   : > { %p1939_p0 = scmp.ne.s32.totalorder %s1933_s16, 0 }
  0x7b   : > { %s1770_s8 = sand.u32 (!%p1939_p0), 1, %s1482_s26   ;;  %p1940_p9 = scmp.ne.s32.totalorder (!%p1939_p0), %s1930_s14, 0 }
  0x7c   : > { %439 = sbr.rel (%p1939_p0) target bundleno = 1772 (0x6ec), region = 72  ;;  %s1058_s9 = sshll.u32 (!%p1939_p0), %s1770_s8, 3 }
  0x7d   : > { %s442_s17 = scalar_lea.sflag (!%p1939_p0), [#allocation3], %s1770_s8  ;;  %s445_s23 = scalar_lea.vmem (!%p1939_p0), [#allocation2], %s1058_s9 }
  0x83   : > { %1461 = dma.done.wait (%p1940_p9), %s442_s17, 128  }
  0x84   : > { %1463 = vsyncadd (%p1940_p9), %s442_s17, 4294967168  ;;  %p1941_p11 = scmp.eq.s32.totalorder %s1592_s29, 0 }
  0x86   : > { %1465 = dma.done.wait (%p1941_p11), [#allocation6], 2048   ;;  %p1942_p8 = pmov %p1941_p11 }
  0x88   : > { %1467 = vsyncadd (%p1942_p8), [#allocation6], 4294965248  ;;  %p1943_p13 = pmov %p1942_p8 }
  0x89   : > { %p1944_p6 = pmov %p1942_p8 }
  0x8a   : > { %1469 = dma.done.wait (%p1943_p13), [#allocation9], 1024  }
  0x8b   : > { %1471 = vsyncadd (%p1944_p6), [#allocation9], 4294966272  ;;  %v501_v0 = vld [vmem:[%s445_s23] sm:$0xff]  ;;  %v1268_v1 = vld [vmem:[#allocation5] sm:$0xff]   ;;  %v1498_v2 = vmov 0.0   ;;  %v505_v4 = vlaneseq  ;;  %vm1499_vm1 = vmmov 0  }
  0x8c   : > { %507 = vadd.xlane.f32.xlu0 %v501_v0  ;;  %1127 = vmatprep.subr.bf16.mxu0 %v1498_v2  ;;  %v1269_v3 = vld [vmem:[#allocation5 + $0x8] sm:$0xff]   ;;  %v1270_v11 = vld [vmem:[#allocation5 + $0x10] sm:$0xff]   ;;  %v1271_v12 = vld [vmem:[#allocation5 + $0x18] sm:$0xff]   ;;  %s1945_s23 = sld [smem:[#allocation17_spill]]  ;;  %s1946_s20 = sld [smem:[#allocation18_spill]] }
  0x8d   : > { %1147 = vmatprep.subr.bf16.mxu1 %v1498_v2  ;;  %1128 = vmatpush3.bf16.msra.mxu0 %v1268_v1  ;;  %v1792_v5 = vand.u32 127, %v505_v4  ;;  %v1272_v13 = vld [vmem:[#allocation5 + $0x20] sm:$0xff]   ;;  %v1273_v14 = vld [vmem:[#allocation5 + $0x28] sm:$0xff]   ;;  %v1274_v15 = vld [vmem:[#allocation5 + $0x30] sm:$0xff]   ;;  %s1947_s21 = sld [smem:[#allocation19_spill]]  ;;  %s1948_s24 = sld [smem:[#allocation20_spill]] }
  0x8e   : > { %1129 = vmatprep.subr.bf16.mxu0 %v1498_v2  ;;  %1143 = vmatprep.mubr.msk.bf16.mxu0 %vm1499_vm1, %v1498_v2  ;;  %v1275_v16 = vld [vmem:[#allocation5 + $0x38] sm:$0xff]   ;;  %v1063_v21 = vld [vmem:[%s1905_s1] ss:$0 sm:$0xff]  ;;  %v1276_v38 = vld [vmem:[#allocation7] sm:$0xff]   ;;  %s1097_s22 = sshll.u32 %s1592_s29, 7  ;;  %s499_s19 = scalar_lea.vmem [#allocation10], %s1058_s9 }
  0x8f   : > { %vm510_vm0 = vcmp.lt.s32.totalorder %v1792_v5, 32  ;;  %1163 = vmatprep.mubr.msk.bf16.mxu1 %vm1499_vm1, %v1498_v2  ;;  %v1064_v23 = vld [vmem:[%s1906_s2] ss:$0 sm:$0xff]  ;;  %1148 = vmatpush3.bf16.msra.mxu1 %v1276_v38  ;;  %v1277_v39 = vld [vmem:[#allocation7 + $0x8] sm:$0xff]   ;;  %v1279_v46 = vld [vmem:[#allocation7 + $0x18] sm:$0xff]   ;;  %s950_s17 = sshll.u32 %s499_s19, 4  ;;  %s1862_s17 = int_to_ptr.vmem [resolvable:$true] %s950_s17 }
  0x90   : > { %v1065_v27 = vld [vmem:[%s1908_s4] ss:$0 sm:$0xff]  ;;  %1149 = vmatprep.subr.bf16.mxu1 %v1498_v2  ;;  %v1280_v47 = vld [vmem:[#allocation7 + $0x20] sm:$0xff]   ;;  %v1281_v48 = vld [vmem:[#allocation7 + $0x28] sm:$0xff]   ;;  %s1949_s16 = sld [smem:[#allocation21_spill]]  ;;  %s937_s29 = scalar_lea.sflag [#allocation4], %s1770_s8 }
  0x91   : > { %1130 = vmatpush3.bf16.msra.mxu0 %v1269_v3  ;;  %v1278_v45 = vld [vmem:[#allocation7 + $0x10] sm:$0xff]   ;;  %v1283_v50 = vld [vmem:[#allocation7 + $0x38] sm:$0xff]   ;;  %s1416_s25 = scalar_lea.vmem %s1862_s17, 128  ;;  %s1500_s9 = smov [#allocation10]  }
  0x92   : > { %1131 = vmatprep.subr.bf16.mxu0 %v1498_v2  ;;  %v1282_v49 = vld [vmem:[#allocation7 + $0x30] sm:$0xff]   ;;  %p1417_p10 = scmp.ne.s32.totalorder %s1862_s17, %s1416_s25  ;;  %s1420_s18 = sshll.u32 %s1500_s9, 4  ;;  %s1421_s18 = int_to_ptr.vmem [resolvable:$false] %s1420_s18 }
  0x93   : > { %1150 = vmatpush3.bf16.msra.mxu1 %v1277_v39  ;;  %v1074_v55 = vld [vmem:[%s1909_s5] ss:$0 sm:$0xff]  ;;  %p1423_p12 = scmp.lt.s32.totalorder %s1862_s17, %s1421_s18 }
  0x94   : > { %1151 = vmatprep.subr.bf16.mxu1 %v1498_v2  ;;  %v1075_v57 = vld [vmem:[%s1910_s6] ss:$0 sm:$0xff]  ;;  %p1418_p3 = pnand %p1417_p10, %p1725_p5 }
  0x95   : > { %1132 = vmatpush3.bf16.msra.mxu0 %v1270_v11  ;;  %v1076_v61 = vld [vmem:[%s1945_s23] ss:$0 sm:$0xff]  ;;  %v1285_v11 = vld [vmem:[#allocation8 + $0x8] sm:$0xff]  }
  0x96   : > { %1133 = vmatprep.subr.bf16.mxu0 %v1498_v2  ;;  %v1290_v5 = vld [vmem:[#allocation8 + $0x30] sm:$0xff]   ;;  %p1419_p7 = pneg %p1418_p3 }
  0x97   : > { %1152 = vmatpush3.bf16.msra.mxu1 %v1278_v45 }
  0x98   : > { %1153 = vmatprep.subr.bf16.mxu1 %v1498_v2 }
  0x99   : > { %1134 = vmatpush3.bf16.msra.mxu0 %v1271_v12 }
  0x9a   : > { %1135 = vmatprep.subr.bf16.mxu0 %v1498_v2 }
  0x9b   : > { %1154 = vmatpush3.bf16.msra.mxu1 %v1279_v46 }
  0x9c   : > { %1155 = vmatprep.subr.bf16.mxu1 %v1498_v2 }
  0x9d   : > { %1136 = vmatpush3.bf16.msra.mxu0 %v1272_v13 }
  0x9e   : > { %1137 = vmatprep.subr.bf16.mxu0 %v1498_v2 }
  0x9f   : > { %1156 = vmatpush3.bf16.msra.mxu1 %v1280_v47 }
  0xa0   : > { %1157 = vmatprep.subr.bf16.mxu1 %v1498_v2 }
  0xa1   : > { %1138 = vmatpush3.bf16.msra.mxu0 %v1273_v14 }
  0xa2   : > { %1139 = vmatprep.subr.bf16.mxu0 %v1498_v2 }
  0xa3   : > { %1158 = vmatpush3.bf16.msra.mxu1 %v1281_v48 }
  0xa4   : > { %1159 = vmatprep.subr.bf16.mxu1 %v1498_v2 }
  0xa5   : > { %1140 = vmatpush3.bf16.msra.mxu0 %v1274_v15 }
  0xa6   : > { %1141 = vmatprep.subr.bf16.mxu0 %v1498_v2 }
  0xa7   : > { %1160 = vmatpush3.bf16.msra.mxu1 %v1282_v49 }
  0xa8   : > { %1161 = vmatprep.subr.bf16.mxu1 %v1498_v2 }
  0xa9   : > { %1142 = vmatpush3.bf16.msra.mxu0 %v1275_v16 }
  0xaa   : > { %1167 = vmatprep.subr.bf16.mxu0 %v1498_v2 }
  0xab   : > { %1162 = vmatpush3.bf16.msra.mxu1 %v1283_v50 }
 0x119   : > { %v508_v6 = vpop.xlane.xlu0 %507 }
 0x11a   : > { %v509_v7 = vmul.f32 0.03125, %v508_v6 }
 0x11c   : > { %v511_v8 = vsub.f32 %v501_v0, %v509_v7 }
 0x11e   : > { %v512_v9 = vsel %vm510_vm0, %v511_v8, 0.0 }
 0x11f   : > { %v513_v10 = vmul.f32 %v512_v9, %v512_v9 }
 0x121   : > { %514 = vadd.xlane.f32.xlu0 %v513_v10  ;;  %v1284_v10 = vld [vmem:[#allocation8] sm:$0xff]  }
 0x1ae   : > { %v515_v17 = vpop.xlane.xlu0 %514 }
 0x1af   : > { %v516_v18 = vmul.f32 0.03125, %v515_v17  ;;  %v1286_v17 = vld [vmem:[#allocation8 + $0x10] sm:$0xff]  }
 0x1b1   : > { %v517_v19 = vadd.f32 1e-05, %v516_v18  ;;  %v1287_v18 = vld [vmem:[#allocation8 + $0x18] sm:$0xff]  }
 0x1b3   : > { %1292 = vrsqrt.f32 %v517_v19  ;;  %v1288_v19 = vld [vmem:[#allocation8 + $0x20] sm:$0xff]  }
 0x1bd   : > { %v1293_v20 = vpop.eup %1292 }
 0x1be   : > { %v519_v22 = vmul.f32 %v1293_v20, %v512_v9  ;;  %v1289_v20 = vld [vmem:[#allocation8 + $0x28] sm:$0xff]  }
 0x1c0   : > { %v526_v24 = vmul.f32 %v1063_v21, %v519_v22  ;;  %v1291_v21 = vld [vmem:[#allocation8 + $0x38] sm:$0xff]  }
 0x1c2   : > { %v533_v25 = vadd.f32 %v1064_v23, %v526_v24 }
 0x1c4   : > { %v534_v26 = vpack.c.bf16 %v533_v25, %v533_v25 }
 0x1c6   : > { %1144 = vmatmul.mubr.bf16.vlgmr.msra.gmra.mrb[0].mxu0 %v534_v26  ;;  %v1085_v26 = vld [vmem:[%s1946_s20] ss:$0 sm:$0xff]  ;;  %s1860_s20 = scalar_lea.hbm %s1949_s16, %s1097_s22 }
 0x1c7   : > { %1183 = vmatprep.mubr.msk.bf16.mxu0 %vm1499_vm1, %v1498_v2  ;;  %1168 = vmatpush3.bf16.msra.mxu0 %v1284_v10 }
 0x1c8   : > { %1169 = vmatprep.subr.bf16.mxu0 %v1498_v2 }
 0x1cb   : > { %1170 = vmatpush3.bf16.msra.mxu0 %v1285_v11 }
 0x1cc   : > { %1171 = vmatprep.subr.bf16.mxu0 %v1498_v2 }
 0x1cf   : > { %1172 = vmatpush3.bf16.msra.mxu0 %v1286_v17 }
 0x1d0   : > { %1173 = vmatprep.subr.bf16.mxu0 %v1498_v2 }
 0x1d3   : > { %1174 = vmatpush3.bf16.msra.mxu0 %v1287_v18 }
 0x1d4   : > { %1175 = vmatprep.subr.bf16.mxu0 %v1498_v2 }
 0x1d7   : > { %1176 = vmatpush3.bf16.msra.mxu0 %v1288_v19 }
 0x1d8   : > { %1177 = vmatprep.subr.bf16.mxu0 %v1498_v2 }
 0x1db   : > { %1178 = vmatpush3.bf16.msra.mxu0 %v1289_v20 }
 0x1dc   : > { %1179 = vmatprep.subr.bf16.mxu0 %v1498_v2 }
 0x1df   : > { %1180 = vmatpush3.bf16.msra.mxu0 %v1290_v5 }
 0x1e0   : > { %1181 = vmatprep.subr.bf16.mxu0 %v1498_v2 }
 0x1e3   : > { %1182 = vmatpush3.bf16.msra.mxu0 %v1291_v21 }
 0x299   : > { %v639_v28 = vpop.f32.mrb[0].mxu0 }
 0x29a   : > { %v640_v29 = vadd.f32 %v1065_v27, %v639_v28  ;;  %v1145_v30 = vpop.f32.mrb[1].mxu0  ;;  %v1086_v28 = vld [vmem:[%s1947_s21] ss:$0 sm:$0xff]  ;;  %s1422_s21 = scalar_lea.vmem %s1421_s18, 256 }
 0x29b   : > { %v642_v31 = vpop.f32.mrb[2].mxu0  ;;  %p1424_p1 = scmp.lt.s32.totalorder %s1422_s21, %s1416_s25 }
 0x29c   : > { %v646_v32 = vmul.f32 0.70710677, %v640_v29  ;;  %v1146_v33 = vpop.f32.mrb[3].mxu0  ;;  %v645_v35 = vmul.f32 0.5, %v640_v29  ;;  %v1087_v31 = vld [vmem:[%s1948_s24] ss:$0 sm:$0xff] }
 0x29d   : > { %p1425_p2 = por %p1424_p1, %p1423_p12 }
 0x29e   : > { %1294 = verf.f32 %v646_v32 }
 0x29f   : > { %p1426_p4 = pnand %p1425_p2, %p1419_p7 }
 0x2a8   : > { %v1295_v34 = vpop.eup %1294 }
 0x2a9   : > { %v648_v36 = vadd.f32 1.0, %v1295_v34 }
 0x2ab   : > { %v649_v37 = vmul.f32 %v648_v36, %v645_v35 }
 0x2ad   : > { %653 = vadd.xlane.f32.xlu1 %v649_v37 }
 0x33a   : > { %v654_v40 = vpop.xlane.xlu1 %653 }
 0x33b   : > { %v655_v41 = vmul.f32 0.03125, %v654_v40 }
 0x33d   : > { %v656_v42 = vsub.f32 %v649_v37, %v655_v41 }
 0x33f   : > { %v657_v43 = vsel %vm510_vm0, %v656_v42, 0.0 }
 0x340   : > { %v658_v44 = vmul.f32 %v657_v43, %v657_v43 }
 0x342   : > { %659 = vadd.xlane.f32.xlu1 %v658_v44 }
 0x3cf   : > { %v660_v51 = vpop.xlane.xlu1 %659 }
 0x3d0   : > { %v661_v52 = vmul.f32 0.03125, %v660_v51 }
 0x3d2   : > { %v662_v53 = vadd.f32 1e-05, %v661_v52 }
 0x3d4   : > { %1296 = vrsqrt.f32 %v662_v53 }
 0x3de   : > { %v1297_v54 = vpop.eup %1296 }
 0x3df   : > { %v664_v56 = vmul.f32 %v1297_v54, %v657_v43 }
 0x3e1   : > { %v671_v58 = vmul.f32 %v1074_v55, %v664_v56 }
 0x3e3   : > { %v678_v59 = vadd.f32 %v1075_v57, %v671_v58 }
 0x3e5   : > { %v679_v60 = vpack.c.bf16 %v678_v59, %v678_v59 }
 0x3e7   : > { %1164 = vmatmul.mubr.bf16.vlgmr.msra.gmra.mrb[0].mxu1 %v679_v60 }
 0x4ba   : > { %v784_v62 = vpop.f32.mrb[0].mxu1 }
 0x4bb   : > { %v785_v63 = vadd.f32 %v1076_v61, %v784_v62  ;;  %v1165_v0 = vpop.f32.mrb[1].mxu1 }
 0x4bc   : > { %v787_v1 = vpop.f32.mrb[2].mxu1 }
 0x4bd   : > { %v791_v3 = vmul.f32 0.70710677, %v785_v63  ;;  %v1166_v4 = vpop.f32.mrb[3].mxu1  ;;  %v790_v7 = vmul.f32 0.5, %v785_v63 }
 0x4bf   : > { %1298 = verf.f32 %v791_v3 }
 0x4c9   : > { %v1299_v6 = vpop.eup %1298 }
 0x4ca   : > { %v793_v8 = vadd.f32 1.0, %v1299_v6 }
 0x4cc   : > { %v794_v9 = vmul.f32 %v793_v8, %v790_v7 }
 0x4ce   : > { %798 = vadd.xlane.f32.xlu0 %v794_v9 }
 0x55b   : > { %v799_v12 = vpop.xlane.xlu0 %798 }
 0x55c   : > { %v800_v13 = vmul.f32 0.03125, %v799_v12 }
 0x55e   : > { %v801_v14 = vsub.f32 %v794_v9, %v800_v13 }
 0x560   : > { %v802_v15 = vsel %vm510_vm0, %v801_v14, 0.0 }
 0x561   : > { %v803_v16 = vmul.f32 %v802_v15, %v802_v15 }
 0x563   : > { %804 = vadd.xlane.f32.xlu1 %v803_v16 }
 0x5f0   : > { %v805_v22 = vpop.xlane.xlu1 %804 }
 0x5f1   : > { %v806_v23 = vmul.f32 0.03125, %v805_v22 }
 0x5f3   : > { %v807_v24 = vadd.f32 1e-05, %v806_v23 }
 0x5f5   : > { %1300 = vrsqrt.f32 %v807_v24 }
 0x5ff   : > { %v1301_v25 = vpop.eup %1300 }
 0x600   : > { %v809_v27 = vmul.f32 %v1301_v25, %v802_v15 }
 0x602   : > { %v816_v29 = vmul.f32 %v1085_v26, %v809_v27 }
 0x604   : > { %v823_v30 = vadd.f32 %v1086_v28, %v816_v29 }
 0x606   : > { %v824_v2 = vpack.c.bf16 %v823_v30, %v823_v30 }
 0x608   : > { %1184 = vmatmul.mubr.bf16.vlgmr.msra.gmra.mrb[4].mxu0 %v824_v2 }
 0x6db   : > { %v929_v32 = vpop.f32.mrb[4].mxu0 }
 0x6dc   : > { %v930_v33 = vadd.f32 %v1087_v31, %v929_v32  ;;  %v1185_v34 = vpop.f32.mrb[5].mxu0 }
 0x6dd   : > { %v932_v35 = vpop.f32.mrb[6].mxu0 }
 0x6de   : > { %935 = vst [vmem:[%s499_s19] sm:$0xff] %v930_v33  ;;  %v1186_v36 = vpop.f32.mrb[7].mxu0 }
 0x6df   : > { %1429 = shalt.err (!%p1426_p4)
}
 0x6e0   : > { %s1430_s8 = scalar_lea.hbm %s1860_s20, 128  ;;  %s1434_s24 = scalar_lea.hbm %s1949_s16, 256 }
 0x6e1   : > { %p1431_p0 = scmp.ne.s32.totalorder %s1860_s20, %s1430_s8  ;;  %p1435_p8 = scmp.lt.u32.totalorder %s1860_s20, %s1949_s16 }
 0x6e2   : > { %p1436_p13 = scmp.lt.u32.totalorder %s1434_s24, %s1430_s8  ;;  %p1438_p10 = scmp.lt.u32.totalorder %s1430_s8, %s1860_s20 }
 0x6e3   : > { %p1432_p9 = pnand %p1431_p0, %p1725_p5 }
 0x6e4   : > { %p1437_p6 = por %p1436_p13, %p1435_p8 }
 0x6e5   : > { %p1433_p11 = pneg %p1432_p9 }
 0x6e6   : > { %p1439_p3 = por %p1438_p10, %p1437_p6 }
 0x6e8   : > { %p1440_p7 = pnand %p1439_p3, %p1433_p11 }
 0x6ea   : > { %1443 = shalt.err (!%p1440_p7)
}
 0x6eb   : > { %1201 = dma.vmem_to_hbm [thread:$0]  (%p1725_p5), %s1862_s17, 128, %s1860_s20, %s937_s29  }
 0x6ec PF: > { %s1950_s23 = sld [smem:[#allocation15_spill]]  ;;  %s1951_s14 = sld [smem:[#allocation16_spill]] }
 0x6ed   : > { %p1953_p1 = scmp.ge.s32.totalorder %s1490_s28, 2 }
 0x6f2   : > { %s962_s25 = sand.u32 1, %s1950_s23   ;;  %p1952_p12 = scmp.ne.s32.totalorder %s1951_s14, 0 }
 0x6f3   : > { %s963_s9 = scalar_lea.sflag [#allocation4], %s962_s25 }
 0x6f4   : > { %p1218_p2 = pnand %p1953_p1, %p1952_p12 }
 0x6f6   : > { %1473 = dma.done.wait (!%p1218_p2), %s963_s9, 128  }
 0x6f7   : > { %1475 = vsyncadd (!%p1218_p2), %s963_s9, 4294967168  ;;  %p28_p4 = scmp.ge.s32.totalorder %s1711_s13, 4   ;;  %s1954_s25 = smov %s1482_s26 }
 0x6f8   : > { %s1955_s26 = smov %s1486_s27  ;;  %s1956_s27 = smov %s1721_s10 }
 0x6f9   : > { %s1957_s28 = smov %s1711_s13  ;;  %30 = sbr.rel (!%p28_p4) target bundleno = 13 (0xd), region = 129 }
 0x700   :  { %968 = vsyncpa [#allocation3], 1 }
 0x701   :  { %970 = vsyncpa [#allocation3 + $0x1], 1 }
 0x702   :  { %971 = vsyncpa [#allocation6], 1 }
 0x703   :  { %972 = vsyncpa [#allocation9], 1 }
 0x704   :  { %973 = vsyncpa [#allocation4], 1 }
 0x705   :  { %975 = vsyncpa [#allocation4 + $0x1], 1 }

</bundles_post_ra>
